<compile_context>
chip_gen: v6e
topology: v6e:2x2x1
jax: 0.10.0
libtpu: 0.0.40
codegen_flags: <defaults>
</compile_context>

<pallas_src>
import functools
import math

import jax
import jax.numpy as jnp
from jax.experimental import pallas as pl
from jax.experimental.pallas import tpu as pltpu

LANE = 128
ACC_SUBLANES = 8                       # f32 native sublane count (accumulator)
TARGET_TILE_BYTES = 2 * 1024 * 1024    # ~2 MiB per input tile per buffer
VMEM_LIMIT_BYTES = 32 * 1024 * 1024    # <= physical VMEM on v5e/v6e/v7x

# Padding sentinel: x=+100, t=1  =>  bce = 100 - 100 + log(1 + exp(-100)) = 0
# exactly in f32 (exp(-100) underflows), hence pt = 1, (1-pt) = 0 and the
# focal term is exactly 0 for every gamma, so padded elements never need a
# mask inside the kernel.
_PAD_X = 100.0
_PAD_T = 1.0


def _cdiv(a, b):
    return -(-a // b)


def _round_up(a, b):
    return _cdiv(a, b) * b


def _sublane_multiple(dtype):
    # 8 rows for 4-byte dtypes, 16 for 2-byte (bf16/f16), 32 for 1-byte.
    return max(8, 32 // jnp.dtype(dtype).itemsize)


def _pow_static(x, gamma):
    """x ** gamma for x >= 0 with a *static* float gamma, Mosaic-friendly."""
    g = float(gamma)
    if g == int(g) and 0 <= int(g) <= 8:
        gi = int(g)
        if gi == 0:
            return jnp.ones_like(x)
        r = x
        for _ in range(gi - 1):
            r = r * x
        return r
    # General gamma: exp(g * log(x)), defined as 0 at x == 0.
    safe = jnp.maximum(x, jnp.float32(1e-30))
    return jnp.where(x > 0, jnp.exp(jnp.float32(g) * jnp.log(safe)),
                     jnp.zeros_like(x))


def _focal_terms(x, t, alpha, gamma):
    """Elementwise focal term (f32). Matches PyTorch BCEWithLogitsLoss math."""
    # Numerically stable BCE-with-logits: max(x,0) - x*t + log1p(exp(-|x|)).
    e = jnp.exp(-jnp.abs(x))
    softplus = jnp.log(1.0 + e)
    # log1p-style tail: when 1+e rounds to 1 (|x| >~ 17) fall back to e
    # (first-order series).  One cmp + one select; keeps sentinel padding at 0.
    softplus = jnp.where(softplus == 0.0, e, softplus)
    bce = jnp.maximum(x, 0.0) - x * t + softplus
    pt = jnp.exp(-bce)
    alpha_t = t * alpha + (1.0 - t) * (1.0 - alpha)
    one_minus_pt = jnp.maximum(1.0 - pt, 0.0)
    return alpha_t * _pow_static(one_minus_pt, gamma) * bce


# --------------------------------------------------------------------------
# Fused focal + sum-reduction kernel (reduction='mean'/'sum').
# Grid: (n_outer [parallel], n_inner [arbitrary / reduction]).
# --------------------------------------------------------------------------
def _focal_sum_kernel(x_ref, t_ref, o_ref, acc_ref, *, alpha, gamma):
    i = pl.program_id(1)

    @pl.when(i == 0)
    def _init():
        acc_ref[...] = jnp.zeros_like(acc_ref)

    x = x_ref[...].astype(jnp.float32)
    t = t_ref[...].astype(jnp.float32)
    focal = _focal_terms(x, t, alpha, gamma)

    # Vreg-aligned accumulation: (block_rows,128) -> (block_rows/8, 8, 128),
    # sum over the leading axis = pure VPU vreg adds, no per-step XLU reduce.
    br = focal.shape[0]
    acc_ref[...] += jnp.sum(
        focal.reshape(br // ACC_SUBLANES, ACC_SUBLANES, LANE), axis=0)

    @pl.when(i == pl.num_programs(1) - 1)
    def _finalize():
        o_ref[...] = acc_ref[...]        # (8, 128) partial for this outer chunk


# --------------------------------------------------------------------------
# Elementwise kernel (reduction='none').
# --------------------------------------------------------------------------
def _focal_none_kernel(x_ref, t_ref, o_ref, *, alpha, gamma):
    x = x_ref[...].astype(jnp.float32)
    t = t_ref[...].astype(jnp.float32)
    o_ref[...] = _focal_terms(x, t, alpha, gamma).astype(o_ref.dtype)


# --------------------------------------------------------------------------
# Wrapper
# --------------------------------------------------------------------------
def _flatten_pad(a, rows_p, pad_value):
    """Flatten to 1D (free for contiguous arrays), pad only if needed."""
    flat = a.reshape(-1)
    pad = rows_p * LANE - flat.shape[0]
    if pad:
        flat = jnp.pad(flat, (0, pad), constant_values=pad_value)
    return flat.reshape(rows_p, LANE)


def focal_loss_pallas(inputs, targets, *, alpha=0.25, gamma=2.0,
                      reduction='mean'):
    assert inputs.shape == targets.shape
    n = math.prod(inputs.shape)

    itemsize = max(jnp.dtype(inputs.dtype).itemsize,
                   jnp.dtype(targets.dtype).itemsize)
    sub = max(_sublane_multiple(inputs.dtype), _sublane_multiple(targets.dtype))

    rows = max(1, _cdiv(n, LANE))
    max_block_rows = max(sub, (TARGET_TILE_BYTES // (LANE * itemsize)) // sub * sub)

    alpha = float(alpha)
    gamma = float(gamma)

    if reduction in ('mean', 'sum'):
        num_tiles = _cdiv(rows, max_block_rows)
        # Split the reduction over 2 outer "parallel" chunks when there is
        # enough work: on multi-TensorCore chips (v7x) each core reduces its
        # own chunk; on 1-TC chips it is just a sequential loop.
        n_outer = 2 if num_tiles >= 2 else 1
        num_tiles = _round_up(num_tiles, n_outer)
        n_inner = num_tiles // n_outer
        block_rows = _round_up(_cdiv(rows, num_tiles), sub)
        rows_p = num_tiles * block_rows

        x2 = _flatten_pad(inputs, rows_p, _PAD_X)
        t2 = _flatten_pad(targets, rows_p, _PAD_T)

        in_spec = pl.BlockSpec((block_rows, LANE),
                               lambda o, i: (o * n_inner + i, 0))
        out_spec = pl.BlockSpec((ACC_SUBLANES, LANE), lambda o, i: (o, 0))

        kern = functools.partial(_focal_sum_kernel, alpha=alpha, gamma=gamma)
        partials = pl.pallas_call(
            kern,
            out_shape=jax.ShapeDtypeStruct((n_outer * ACC_SUBLANES, LANE),
                                           jnp.float32),
            grid_spec=pltpu.PrefetchScalarGridSpec(
                num_scalar_prefetch=0,
                grid=(n_outer, n_inner),
                in_specs=[in_spec, in_spec],
                out_specs=out_spec,
                scratch_shapes=[pltpu.VMEM((ACC_SUBLANES, LANE), jnp.float32)]),
            compiler_params=pltpu.CompilerParams(
                dimension_semantics=("parallel", "arbitrary"),
                vmem_limit_bytes=VMEM_LIMIT_BYTES),
        )(x2, t2)
        total = jnp.sum(partials)          # tiny (n_outer*8, 128) reduce in XLA
        if reduction == 'mean':
            return total / jnp.float32(n)
        return total

    if reduction == 'none':
        num_tiles = _cdiv(rows, max_block_rows)
        block_rows = _round_up(_cdiv(rows, num_tiles), sub)
        rows_p = num_tiles * block_rows

        x2 = _flatten_pad(inputs, rows_p, _PAD_X)
        t2 = _flatten_pad(targets, rows_p, _PAD_T)

        tile_spec = pl.BlockSpec((block_rows, LANE), lambda i: (i, 0))
        kern = functools.partial(_focal_none_kernel, alpha=alpha, gamma=gamma)
        out2 = pl.pallas_call(
            kern,
            out_shape=jax.ShapeDtypeStruct((rows_p, LANE), inputs.dtype),
            grid_spec=pltpu.PrefetchScalarGridSpec(
                num_scalar_prefetch=0,
                grid=(num_tiles,),
                in_specs=[tile_spec, tile_spec],
                out_specs=tile_spec),
            compiler_params=pltpu.CompilerParams(
                dimension_semantics=("parallel",),
                vmem_limit_bytes=VMEM_LIMIT_BYTES),
        )(x2, t2)
        flat = out2.reshape(-1)
        if flat.shape[0] != n:             # skip the slice when tile-aligned
            flat = flat[:n]
        return flat.reshape(inputs.shape)

    raise ValueError(f"unsupported reduction: {reduction}")


# --------------------------------------------------------------------------
# Pure-JAX reference (faithful port of the PyTorch FocalLoss.forward)
# --------------------------------------------------------------------------
def focal_loss_ref(inputs, targets, *, alpha=0.25, gamma=2.0, reduction='mean'):
    x = inputs.astype(jnp.float32)
    t = targets.astype(jnp.float32)
    bce = jnp.maximum(x, 0.0) - x * t + jnp.log1p(jnp.exp(-jnp.abs(x)))
    pt = jnp.exp(-bce)
    alpha_t = t * alpha + (1.0 - t) * (1.0 - alpha)
    focal = alpha_t * (1.0 - pt) ** gamma * bce
    if reduction == 'mean':
        return focal.mean()
    if reduction == 'sum':
        return focal.sum()
    return focal


if __name__ == "__main__":
    key = jax.random.PRNGKey(0)
    k0, k1, k2, k3 = jax.random.split(key, 4)

    # Lane-aligned case.
    shape = (2, 4, 16, 16)
    logits = jax.random.normal(k0, shape, jnp.float32) * 2.0
    targets = jax.random.bernoulli(k1, 0.3, shape).astype(jnp.float32)

    out_mean = jax.block_until_ready(
        focal_loss_pallas(logits, targets, reduction='mean'))
    out_sum = jax.block_until_ready(
        focal_loss_pallas(logits, targets, reduction='sum'))
    out_none = jax.block_until_ready(
        focal_loss_pallas(logits, targets, reduction='none'))

    ref_mean = focal_loss_ref(logits, targets, reduction='mean')
    ref_sum = focal_loss_ref(logits, targets, reduction='sum')
    ref_none = focal_loss_ref(logits, targets, reduction='none')

    assert out_none.shape == shape, out_none.shape
    assert jnp.allclose(out_mean, ref_mean, rtol=1e-4, atol=1e-6), \
        (float(out_mean), float(ref_mean))
    assert jnp.allclose(out_sum, ref_sum, rtol=1e-4, atol=1e-3), \
        (float(out_sum), float(ref_sum))
    assert jnp.allclose(out_none, ref_none, rtol=1e-4, atol=1e-5), \
        float(jnp.max(jnp.abs(out_none - ref_none)))

    # Unaligned case (exercises the sentinel-padding path, no in-kernel mask).
    shape2 = (3, 5, 7)
    logits2 = jax.random.normal(k2, shape2, jnp.float32) * 3.0
    targets2 = jax.random.bernoulli(k3, 0.5, shape2).astype(jnp.float32)
    m2 = jax.block_until_ready(
        focal_loss_pallas(logits2, targets2, reduction='mean'))
    n2 = jax.block_until_ready(
        focal_loss_pallas(logits2, targets2, reduction='none'))
    assert jnp.allclose(m2, focal_loss_ref(logits2, targets2, reduction='mean'),
                        rtol=1e-4, atol=1e-6), float(m2)
    assert jnp.allclose(n2, focal_loss_ref(logits2, targets2, reduction='none'),
                        rtol=1e-4, atol=1e-5)

    print("KERNEL_OK")
</pallas_src>

<mosaic_0001>
module attributes {stable_mosaic.version = 11 : i64} {
  func.func @_focal_sum_kernel(%arg0: i32, %arg1: i32, %arg2: memref<16x128xf32, #tpu.memory_space<vmem>>, %arg3: memref<16x128xf32, #tpu.memory_space<vmem>>, %arg4: memref<8x128xf32, #tpu.memory_space<vmem>>, %arg5: memref<8x128xf32, #tpu.memory_space<vmem>>) attributes {dimension_semantics = [#tpu.dimension_semantics<parallel>, #tpu.dimension_semantics<arbitrary>], iteration_bounds = array<i64: 1, 1>, scalar_prefetch = 0 : i64, scratch_operands = 1 : i64, tpu.core_type = #tpu.core_type<tc>, window_params = [{transform_indices = @transform_0, window_bounds = array<i64: 16, 128>}, {transform_indices = @transform_1, window_bounds = array<i64: 16, 128>}, {transform_indices = @transform_2, window_bounds = array<i64: 8, 128>}]} {
    %c0_i32 = arith.constant 0 : i32
    %0 = arith.cmpi eq, %arg1, %c0_i32 : i32
    %1 = arith.extui %0 : i1 to i32
    %c0_i32_0 = arith.constant 0 : i32
    %2 = arith.cmpi ne, %1, %c0_i32_0 : i32
    scf.if %2 {
      %cst_20 = arith.constant 0.000000e+00 : f32
      %45 = vector.broadcast %cst_20 : f32 to vector<8x128xf32>
      %c0_21 = arith.constant 0 : index
      %c0_22 = arith.constant 0 : index
      %46 = vector.load %arg5[%c0_21, %c0_22] : memref<8x128xf32, #tpu.memory_space<vmem>>, vector<8x128xf32>
      tpu.vector_store %arg5[%c0_21, %c0_22], %45 {strides = array<i32>} : memref<8x128xf32, #tpu.memory_space<vmem>>, vector<8x128xf32>,
    } else {
    }
    %c0 = arith.constant 0 : index
    %c0_1 = arith.constant 0 : index
    %3 = vector.load %arg2[%c0, %c0_1] : memref<16x128xf32, #tpu.memory_space<vmem>>, vector<16x128xf32>
    %c0_2 = arith.constant 0 : index
    %c0_3 = arith.constant 0 : index
    %4 = vector.load %arg3[%c0_2, %c0_3] : memref<16x128xf32, #tpu.memory_space<vmem>>, vector<16x128xf32>
    %5 = math.absf %3 : vector<16x128xf32>
    %cst = arith.constant 0.000000e+00 : f32
    %6 = vector.broadcast %cst : f32 to vector<16x128xf32>
    %7 = arith.subf %6, %5 : vector<16x128xf32>
    %8 = math.exp %7 : vector<16x128xf32>
    %cst_4 = arith.constant 1.000000e+00 : f32
    %9 = vector.broadcast %cst_4 : f32 to vector<16x128xf32>
    %10 = arith.addf %9, %8 : vector<16x128xf32>
    %11 = math.log %10 : vector<16x128xf32>
    %cst_5 = arith.constant 0.000000e+00 : f32
    %12 = vector.broadcast %cst_5 : f32 to vector<16x128xf32>
    %13 = arith.cmpf oeq, %11, %12 : vector<16x128xf32>
    %14 = arith.select %13, %8, %11 : vector<16x128xi1>, vector<16x128xf32>
    %cst_6 = arith.constant 0.000000e+00 : f32
    %15 = vector.broadcast %cst_6 : f32 to vector<16x128xf32>
    %16 = arith.maximumf %3, %15 : vector<16x128xf32>
    %17 = arith.mulf %3, %4 : vector<16x128xf32>
    %18 = arith.subf %16, %17 : vector<16x128xf32>
    %19 = arith.addf %18, %14 : vector<16x128xf32>
    %cst_7 = arith.constant 0.000000e+00 : f32
    %20 = vector.broadcast %cst_7 : f32 to vector<16x128xf32>
    %21 = arith.subf %20, %19 : vector<16x128xf32>
    %22 = math.exp %21 : vector<16x128xf32>
    %cst_8 = arith.constant 2.500000e-01 : f32
    %23 = vector.broadcast %cst_8 : f32 to vector<16x128xf32>
    %24 = arith.mulf %4, %23 : vector<16x128xf32>
    %cst_9 = arith.constant 1.000000e+00 : f32
    %25 = vector.broadcast %cst_9 : f32 to vector<16x128xf32>
    %26 = arith.subf %25, %4 : vector<16x128xf32>
    %cst_10 = arith.constant 7.500000e-01 : f32
    %27 = vector.broadcast %cst_10 : f32 to vector<16x128xf32>
    %28 = arith.mulf %26, %27 : vector<16x128xf32>
    %29 = arith.addf %24, %28 : vector<16x128xf32>
    %cst_11 = arith.constant 1.000000e+00 : f32
    %30 = vector.broadcast %cst_11 : f32 to vector<16x128xf32>
    %31 = arith.subf %30, %22 : vector<16x128xf32>
    %cst_12 = arith.constant 0.000000e+00 : f32
    %32 = vector.broadcast %cst_12 : f32 to vector<16x128xf32>
    %33 = arith.maximumf %31, %32 : vector<16x128xf32>
    %34 = arith.mulf %33, %33 : vector<16x128xf32>
    %35 = arith.mulf %29, %34 : vector<16x128xf32>
    %36 = arith.mulf %35, %19 : vector<16x128xf32>
    %c0_13 = arith.constant 0 : index
    %c0_14 = arith.constant 0 : index
    %37 = vector.load %arg5[%c0_13, %c0_14] : memref<8x128xf32, #tpu.memory_space<vmem>>, vector<8x128xf32>
    %38 = vector.shape_cast %36 : vector<16x128xf32> to vector<2x8x128xf32>
    %cst_15 = arith.constant dense<0.000000e+00> : vector<8x128xf32>
    %39 = vector.multi_reduction <add>, %38, %cst_15 [0] : vector<2x8x128xf32> to vector<8x128xf32>
    %40 = arith.addf %37, %39 : vector<8x128xf32>
    %c0_16 = arith.constant 0 : index
    %c0_17 = arith.constant 0 : index
    %41 = vector.load %arg5[%c0_16, %c0_17] : memref<8x128xf32, #tpu.memory_space<vmem>>, vector<8x128xf32>
    tpu.vector_store %arg5[%c0_16, %c0_17], %40 {strides = array<i32>} : memref<8x128xf32, #tpu.memory_space<vmem>>, vector<8x128xf32>,
    %c0_i32_18 = arith.constant 0 : i32
    %42 = arith.cmpi eq, %arg1, %c0_i32_18 : i32
    %43 = arith.extui %42 : i1 to i32
    %c0_i32_19 = arith.constant 0 : i32
    %44 = arith.cmpi ne, %43, %c0_i32_19 : i32
    scf.if %44 {
      %c0_20 = arith.constant 0 : index
      %c0_21 = arith.constant 0 : index
      %45 = vector.load %arg5[%c0_20, %c0_21] : memref<8x128xf32, #tpu.memory_space<vmem>>, vector<8x128xf32>
      %c0_22 = arith.constant 0 : index
      %c0_23 = arith.constant 0 : index
      %46 = vector.load %arg4[%c0_22, %c0_23] : memref<8x128xf32, #tpu.memory_space<vmem>>, vector<8x128xf32>
      tpu.vector_store %arg4[%c0_22, %c0_23], %45 {strides = array<i32>} : memref<8x128xf32, #tpu.memory_space<vmem>>, vector<8x128xf32>,
    } else {
    }
    return
  }
  func.func @transform_0(%arg0: i32, %arg1: i32) -> (i32, i32) {
    %c1_i32 = arith.constant 1 : i32
    %0 = arith.muli %arg0, %c1_i32 : i32
    %1 = arith.addi %0, %arg1 : i32
    %c0_i32 = arith.constant 0 : i32
    %c0_i32_0 = arith.constant 0 : i32
    return %1, %c0_i32 : i32, i32
  }
  func.func @transform_1(%arg0: i32, %arg1: i32) -> (i32, i32) {
    %c1_i32 = arith.constant 1 : i32
    %0 = arith.muli %arg0, %c1_i32 : i32
    %1 = arith.addi %0, %arg1 : i32
    %c0_i32 = arith.constant 0 : i32
    %c0_i32_0 = arith.constant 0 : i32
    return %1, %c0_i32 : i32, i32
  }
  func.func @transform_2(%arg0: i32, %arg1: i32) -> (i32, i32) {
    %c0_i32 = arith.constant 0 : i32
    %c0_i32_0 = arith.constant 0 : i32
    return %arg0, %c0_i32 : i32, i32
  }
}

</mosaic_0001>

<bundles_post_ra>
// kernel: tpu_custom_call.1
= control target key start
LH: loop header
LB: loop body
LE: loop exit
PB: predicated region body
PF: predicated region fallthrough
CT: control target
= control target key end

     0   :  { %7 = vsyncpa [#allocation4], 0  ;;  %s248_s0 = inlined_call_operand.hbm [shape: f32[16,128], index: 0, kind: input, shape index: {}]   ;;  %s249_s1 = inlined_call_operand.hbm [shape: f32[16,128], index: 1, kind: input, shape index: {}]   ;;  %s250_s2 = inlined_call_operand.hbm [shape: f32[8,128], index: 2, kind: output, shape index: {}]  }
   0x1   :  { %8 = vsyncpa [#allocation7], 0 }
   0x2   :  { %9 = vsyncpa [#allocation5], 0  ;;  %s219_s9 = smov [#allocation3]  }
   0x3   :  { %s19_s10 = sshll.u32 %s219_s9, 4  ;;  %s20_s10 = int_to_ptr.vmem [resolvable:$true] %s19_s10 }
   0x4   :  { %s161_s11 = scalar_lea.vmem %s20_s10, 256  ;;  %p166_p1 = scmp.lt.s32.totalorder %s20_s10, %s20_s10 }
   0x5   :  { %p162_p0 = scmp.ne.s32.totalorder %s20_s10, %s161_s11  ;;  %p167_p2 = scmp.lt.s32.totalorder %s161_s11, %s161_s11 }
   0x7   :  { %p168_p3 = por %p167_p2, %p166_p1 }
   0x9   :  { %p169_p4 = pnand %p168_p3, %p162_p0 }
   0xb   :  { %172 = shalt.err (!%p169_p4)
}
   0xc   :  { %s220_s12 = smov 128   ;;  %s221_s13 = smov 8  }
   0xd   :  { %25 = dma.hbm_to_vmem [thread:$0]  %s248_s0, 256, %s20_s10, [#allocation4], %s220_s12, %s220_s12, %s221_s13  }
   0xe   :  { %s222_s16 = smov [#allocation6]  }
   0xf   :  { %s35_s17 = sshll.u32 %s222_s16, 4  ;;  %s36_s17 = int_to_ptr.vmem [resolvable:$true] %s35_s17 }
  0x10   :  { %s181_s18 = scalar_lea.vmem %s36_s17, 256  ;;  %p186_p6 = scmp.lt.s32.totalorder %s36_s17, %s36_s17 }
  0x11   :  { %p182_p5 = scmp.ne.s32.totalorder %s36_s17, %s181_s18  ;;  %p187_p7 = scmp.lt.s32.totalorder %s181_s18, %s181_s18 }
  0x13   :  { %p188_p8 = por %p187_p7, %p186_p6 }
  0x15   :  { %p189_p9 = pnand %p188_p8, %p182_p5 }
  0x17   :  { %192 = shalt.err (!%p189_p9)
}
  0x18   :  { %41 = dma.hbm_to_vmem [thread:$0]  %s249_s1, 256, %s36_s17, [#allocation7], %s220_s12, %s220_s12, %s221_s13  }
  0x19   :  { %213 = dma.done.wait [#allocation4], 256  }
  0x1a   :  { %214 = vsyncadd [#allocation4], 4294967040 }
  0x1b   :  { %215 = dma.done.wait [#allocation7], 256  }
  0x1c   :  { %216 = vsyncadd [#allocation7], 4294967040  ;;  %v57_v0 = vld [vmem:[#allocation3] sm:$0xff]  ;;  %v58_v1 = vld [vmem:[#allocation3 + $0x8] sm:$0xff]  ;;  %s223_s0 = smov [#allocation8]  }
  0x1d   :  { %v61_v2 = vand.u32 2147483647, %v57_v0  ;;  %v62_v3 = vand.u32 2147483647, %v58_v1  ;;  %v59_v12 = vld [vmem:[#allocation6] sm:$0xff]  ;;  %v60_v13 = vld [vmem:[#allocation6 + $0x8] sm:$0xff] }
  0x1e   :  { %v79_v14 = vmax.f32 %v57_v0, 0.0  ;;  %v81_v15 = vmul.f32 %v59_v12, %v57_v0  ;;  %v80_v16 = vmax.f32 %v58_v1, 0.0  ;;  %v82_v17 = vmul.f32 %v60_v13, %v58_v1  ;;  %s126_s1 = sshll.u32 %s223_s0, 4  ;;  %s127_s1 = int_to_ptr.vmem [resolvable:$true] %s126_s1 }
  0x1f   :  { %v63_v4 = vsub.f32 0.0, %v61_v2  ;;  %v64_v5 = vsub.f32 0.0, %v62_v3  ;;  %v95_v32 = vsub.f32 1.0, %v59_v12  ;;  %v96_v33 = vsub.f32 1.0, %v60_v13  ;;  %s193_s21 = scalar_lea.vmem %s127_s1, 128  ;;  %p198_p11 = scmp.lt.s32.totalorder %s127_s1, %s127_s1 }
  0x20   :  { %v83_v21 = vsub.f32 %v79_v14, %v81_v15  ;;  %v84_v23 = vsub.f32 %v80_v16, %v82_v17  ;;  %v93_v34 = vmul.f32 0.25, %v59_v12  ;;  %v94_v37 = vmul.f32 0.25, %v60_v13  ;;  %p194_p10 = scmp.ne.s32.totalorder %s127_s1, %s193_s21  ;;  %p199_p12 = scmp.lt.s32.totalorder %s193_s21, %s193_s21 }
  0x21   :  { %v65_v6 = vmul.f32 1.442695, %v63_v4  ;;  %v67_v7 = vmul.f32 1.442695, %v64_v5  ;;  %v97_v35 = vmul.f32 0.75, %v95_v32  ;;  %v98_v38 = vmul.f32 0.75, %v96_v33 }
  0x22   :  { %p200_p13 = por %p199_p12, %p198_p11 }
  0x23   :  { %141 = vpow2.f32 %v65_v6  ;;  %v99_v42 = vadd.f32 %v97_v35, %v93_v34  ;;  %v100_v44 = vadd.f32 %v98_v38, %v94_v37 }
  0x24   :  { %143 = vpow2.f32 %v67_v7  ;;  %p201_p0 = pnand %p200_p13, %p194_p10 }
  0x30   :  { %v142_v8 = vpop.eup %141 }
  0x31   :  { %v144_v9 = vpop.eup %143  ;;  %v69_v10 = vadd.f32 1.0, %v142_v8 }
  0x32   :  { %v70_v11 = vadd.f32 1.0, %v144_v9 }
  0x33   :  { %145 = vlog2.f32 %v69_v10 }
  0x34   :  { %147 = vlog2.f32 %v70_v11 }
  0x40   :  { %v146_v18 = vpop.eup %145 }
  0x41   :  { %v148_v19 = vpop.eup %147  ;;  %v72_v20 = vmul.f32 0.6931472, %v146_v18 }
  0x42   :  { %v74_v22 = vmul.f32 0.6931472, %v148_v19 }
  0x43   :  { %vm75_vm0 = vcmp.eq.f32.partialorder %v72_v20, 0.0 }
  0x44   :  { %vm76_vm1 = vcmp.eq.f32.partialorder %v74_v22, 0.0  ;;  %v77_v24 = vsel %vm75_vm0, %v142_v8, %v72_v20 }
  0x45   :  { %v78_v25 = vsel %vm76_vm1, %v144_v9, %v74_v22  ;;  %v85_v26 = vadd.f32 %v83_v21, %v77_v24 }
  0x46   :  { %v86_v27 = vadd.f32 %v84_v23, %v78_v25 }
  0x47   :  { %v87_v28 = vsub.f32 0.0, %v85_v26 }
  0x48   :  { %v88_v29 = vsub.f32 0.0, %v86_v27 }
  0x49   :  { %v89_v30 = vmul.f32 1.442695, %v87_v28 }
  0x4a   :  { %v91_v31 = vmul.f32 1.442695, %v88_v29 }
  0x4b   :  { %149 = vpow2.f32 %v89_v30 }
  0x4c   :  { %151 = vpow2.f32 %v91_v31 }
  0x58   :  { %v150_v36 = vpop.eup %149 }
  0x59   :  { %v152_v39 = vpop.eup %151  ;;  %v101_v40 = vsub.f32 1.0, %v150_v36 }
  0x5a   :  { %v102_v41 = vsub.f32 1.0, %v152_v39 }
  0x5b   :  { %v103_v43 = vmax.f32 %v101_v40, 0.0 }
  0x5c   :  { %v104_v45 = vmax.f32 %v102_v41, 0.0 }
  0x5d   :  { %v105_v46 = vmul.f32 %v103_v43, %v103_v43 }
  0x5e   :  { %v106_v47 = vmul.f32 %v104_v45, %v104_v45 }
  0x5f   :  { %v107_v48 = vmul.f32 %v105_v46, %v99_v42 }
  0x60   :  { %v108_v49 = vmul.f32 %v106_v47, %v100_v44 }
  0x61   :  { %v109_v50 = vmul.f32 %v107_v48, %v85_v26 }
  0x62   :  { %v110_v51 = vmul.f32 %v108_v49, %v86_v27 }
  0x64   :  { %v112_v52 = vadd.f32 %v110_v51, %v109_v50 }
  0x66   :  { %119 = vst [vmem:[#allocation8] sm:$0xff] %v112_v52 }
  0x67   :  { %204 = shalt.err (!%p201_p0)
}
  0x68   :  { %129 = dma.vmem_to_hbm [thread:$0]  %s127_s1, 128, %s250_s2, [#allocation5]  }
  0x69   :  { %217 = dma.done.wait [#allocation5], 128  }
  0x6a   :  { %218 = vsyncadd [#allocation5], 4294967168 }
  0x6b   :  { %133 = vsyncpa [#allocation4], 1 }
  0x6c   :  { %134 = vsyncpa [#allocation7], 1 }
  0x6d   :  { %135 = vsyncpa [#allocation5], 1 }

</bundles_post_ra>
